<compile_context>
chip_gen: v7x
topology: tpu7x:2x2x1
jax: 0.10.0
libtpu: 0.0.40
codegen_flags: <defaults>
</compile_context>

<pallas_src>
import jax
import jax.numpy as jnp
from jax.experimental import pallas as pl
from jax.experimental.pallas import tpu as pltpu


# ----------------------------------------------------------------------------
# Kernels
# ----------------------------------------------------------------------------
def _matmul_bias_kernel(x_ref, w_ref, b_ref, o_ref):
    """Single-K-step path: one MXU pass per (i, j) output tile, bias fused."""
    o_ref[...] = (
        jnp.dot(x_ref[...], w_ref[...], preferred_element_type=jnp.float32)
        + b_ref[...]
    ).astype(o_ref.dtype)


def _matmul_bias_accum_kernel(x_ref, w_ref, b_ref, o_ref):
    """Tiled-K path: o_ref (f32) is resident across k; bias is the accumulator init."""
    k = pl.program_id(2)

    @pl.when(k == 0)
    def _():
        o_ref[...] = jnp.broadcast_to(b_ref[...], o_ref.shape).astype(o_ref.dtype)

    # Output is hard-coded f32, so accumulating directly into o_ref is exact.
    o_ref[...] += jnp.dot(x_ref[...], w_ref[...], preferred_element_type=jnp.float32)


# ----------------------------------------------------------------------------
# Tile selection
# ----------------------------------------------------------------------------
def _round_up(x, m):
    return ((x + m - 1) // m) * m


def _device_defaults():
    """Per-generation tile/VMEM defaults (conservative if chip is unknown)."""
    try:
        kind = jax.devices()[0].device_kind.lower()
    except Exception:  # pragma: no cover - defensive
        kind = ""
    if "7x" in kind or "v7" in kind:
        # v7x: 2 TensorCores/chip but only 64 MiB physical VMEM per TC.
        return dict(tm=512, tn=512, k_align=256,
                    vmem_limit=48 * 1024 * 1024, vmem_frac=0.70, num_cores=2)
    if "v6" in kind:
        # v6e: 128 MiB VMEM -> large tiles, K reduction in 1-2 steps.
        return dict(tm=512, tn=512, k_align=256,
                    vmem_limit=96 * 1024 * 1024, vmem_frac=0.80, num_cores=1)
    if "v5 lite" in kind or "v5e" in kind or "v5lite" in kind:
        # v5e: lowest HBM BW -> data reuse matters most; VMEM same as v6e.
        return dict(tm=512, tn=512, k_align=128,
                    vmem_limit=96 * 1024 * 1024, vmem_frac=0.80, num_cores=1)
    # Unknown TPU: lane/MXU aligned, safe everywhere (incl. 64 MiB parts).
    return dict(tm=512, tn=512, k_align=128,
                vmem_limit=48 * 1024 * 1024, vmem_frac=0.70, num_cores=1)


# ----------------------------------------------------------------------------
# Wrapper
# ----------------------------------------------------------------------------
def multiple_response_forward(x, W, b, *, tm=None, tn=None, tk=None,
                              cast_inputs_to_bf16=False):
    """y = x @ W + b via a tiled Pallas matmul-plus-bias kernel."""
    M, K = x.shape
    K2, N = W.shape
    assert K == K2 and b.shape == (N,)

    cfg = _device_defaults()
    in_bytes = 2 if cast_inputs_to_bf16 else 4

    # --- lane-pad narrow outputs so output stores are unmasked / lane-dense ---
    N_pad = N
    if N < 128:
        N_pad = 128
        W = jnp.pad(W, ((0, 0), (0, N_pad - N)))
        b = jnp.pad(b, (0, N_pad - N))

    # --- tm / tn: full extent when the dim fits the preferred tile ---
    if tm is None:
        tm = M if M <= cfg["tm"] else cfg["tm"]
    if tn is None:
        tn = N_pad if N_pad <= cfg["tn"] else cfg["tn"]

    # --- v7x megacore: guarantee >= 2 parallel output blocks ---
    if (cfg["num_cores"] >= 2 and M >= 16
            and pl.cdiv(M, tm) * pl.cdiv(N_pad, tn) < 2):
        tm = _round_up(pl.cdiv(M, 2), 8)

    # --- tk: grow toward full K under the double-buffered VMEM budget.
    #     Reaching K makes W weight-stationary (its block index becomes
    #     constant) and drops the reduction axis entirely. ---
    if tk is None:
        budget = int(cfg["vmem_limit"] * cfg["vmem_frac"])
        budget -= 2 * tm * tn * 4                 # double-buffered f32 output tile
        denom = 2 * (tm + tn) * in_bytes          # double-buffered x + W tiles / unit k
        tk_max = budget // max(denom, 1)
        if tk_max >= K:
            tk = K
        else:
            tk = max(cfg["k_align"], (tk_max // cfg["k_align"]) * cfg["k_align"])
    else:
        tk = min(tk, K)

    if cast_inputs_to_bf16:
        # Opt-in only: halves DMA bytes / doubles MXU rate when the inputs are
        # genuinely re-read; accumulation/output stay f32.
        x = x.astype(jnp.bfloat16)
        W = W.astype(jnp.bfloat16)

    b2 = b.reshape(1, N_pad).astype(jnp.float32)  # lane-dense bias tile
    out_shape = jax.ShapeDtypeStruct((M, N_pad), jnp.float32)
    cost = pl.CostEstimate(
        flops=2 * M * K * N_pad,
        bytes_accessed=in_bytes * (M * K + K * N_pad) + 4 * M * N_pad,
        transcendentals=0,
    )

    if tk >= K:
        # Single K step: no reduction axis, no phase gates, no accumulator.
        grid = (pl.cdiv(M, tm), pl.cdiv(N_pad, tn))
        out = pl.pallas_call(
            _matmul_bias_kernel,
            out_shape=out_shape,
            grid_spec=pltpu.PrefetchScalarGridSpec(
                num_scalar_prefetch=0,
                grid=grid,
                in_specs=[
                    pl.BlockSpec((tm, K), lambda i, j: (i, 0)),
                    pl.BlockSpec((K, tn), lambda i, j: (0, j)),
                    pl.BlockSpec((1, tn), lambda i, j: (0, j)),
                ],
                out_specs=pl.BlockSpec((tm, tn), lambda i, j: (i, j)),
            ),
            compiler_params=pltpu.CompilerParams(
                dimension_semantics=("parallel", "parallel"),
                vmem_limit_bytes=cfg["vmem_limit"],
            ),
            cost_estimate=cost,
        )(x, W, b2)
    else:
        # Tiled reduction: pad K with zeros so the tail k block is exact.
        K_pad = _round_up(K, tk)
        if K_pad != K:
            x = jnp.pad(x, ((0, 0), (0, K_pad - K)))
            W = jnp.pad(W, ((0, K_pad - K), (0, 0)))
        grid = (pl.cdiv(M, tm), pl.cdiv(N_pad, tn), K_pad // tk)
        out = pl.pallas_call(
            _matmul_bias_accum_kernel,
            out_shape=out_shape,
            grid_spec=pltpu.PrefetchScalarGridSpec(
                num_scalar_prefetch=0,
                grid=grid,
                in_specs=[
                    pl.BlockSpec((tm, tk), lambda i, j, k: (i, k)),
                    pl.BlockSpec((tk, tn), lambda i, j, k: (k, j)),
                    pl.BlockSpec((1, tn), lambda i, j, k: (0, j)),
                ],
                out_specs=pl.BlockSpec((tm, tn), lambda i, j, k: (i, j)),
            ),
            compiler_params=pltpu.CompilerParams(
                dimension_semantics=("parallel", "parallel", "arbitrary"),
                vmem_limit_bytes=cfg["vmem_limit"],
            ),
            cost_estimate=cost,
        )(x, W, b2)

    return out[:, :N] if N_pad != N else out


# ----------------------------------------------------------------------------
# Self-test
# ----------------------------------------------------------------------------
if __name__ == "__main__":
    key = jax.random.PRNGKey(0)
    kx, kw, kx2, kw2, kb2 = jax.random.split(key, 5)

    # 1) Small shapes matching the module spec: narrow output -> lane-padded
    #    to 128, single-K-step / 2-D grid path.
    batch_size, input_dim, output_dim = 8, 32, 16
    x = jax.random.normal(kx, (batch_size, input_dim), dtype=jnp.float32)
    W = jax.random.normal(kw, (input_dim, output_dim), dtype=jnp.float32) * 0.01
    b = jnp.zeros((output_dim,), dtype=jnp.float32)

    y = jax.block_until_ready(multiple_response_forward(x, W, b))
    y_ref = x @ W + b
    assert y.shape == (batch_size, output_dim)
    assert jnp.allclose(y, y_ref, atol=1e-5, rtol=1e-5)

    # 2) Exercise the tiled-K accumulator path with a ragged K (K % tk != 0)
    #    and a non-128-multiple N, by forcing small tiles explicitly.
    M2, K2d, N2 = 256, 384, 96
    x2 = jax.random.normal(kx2, (M2, K2d), dtype=jnp.float32)
    W2 = jax.random.normal(kw2, (K2d, N2), dtype=jnp.float32) * 0.01
    b2 = jax.random.normal(kb2, (N2,), dtype=jnp.float32) * 0.1

    y2 = jax.block_until_ready(
        multiple_response_forward(x2, W2, b2, tm=128, tn=128, tk=256))
    y2_ref = x2 @ W2 + b2
    assert y2.shape == (M2, N2)
    assert jnp.allclose(y2, y2_ref, atol=1e-3, rtol=1e-3)

    print("KERNEL_OK")
</pallas_src>

<mosaic_0001>
module attributes {stable_mosaic.version = 11 : i64} {
  func.func @_matmul_bias_kernel(%arg0: i32, %arg1: i32, %arg2: memref<8x32xf32, #tpu.memory_space<vmem>>, %arg3: memref<32x128xf32, #tpu.memory_space<vmem>>, %arg4: memref<1x128xf32, #tpu.memory_space<vmem>>, %arg5: memref<8x128xf32, #tpu.memory_space<vmem>>) attributes {dimension_semantics = [#tpu.dimension_semantics<parallel>, #tpu.dimension_semantics<parallel>], iteration_bounds = array<i64: 1, 1>, scalar_prefetch = 0 : i64, scratch_operands = 0 : i64, tpu.core_type = #tpu.core_type<tc>, window_params = [{transform_indices = @transform_0, window_bounds = array<i64: 8, 32>}, {transform_indices = @transform_1, window_bounds = array<i64: 32, 128>}, {transform_indices = @transform_2, window_bounds = array<i64: 1, 128>}, {transform_indices = @transform_3, window_bounds = array<i64: 8, 128>}]} {
    %c0 = arith.constant 0 : index
    %c0_0 = arith.constant 0 : index
    %0 = vector.load %arg2[%c0, %c0_0] : memref<8x32xf32, #tpu.memory_space<vmem>>, vector<8x32xf32>
    %c0_1 = arith.constant 0 : index
    %c0_2 = arith.constant 0 : index
    %1 = vector.load %arg3[%c0_1, %c0_2] : memref<32x128xf32, #tpu.memory_space<vmem>>, vector<32x128xf32>
    %cst = arith.constant dense<0.000000e+00> : vector<8x128xf32>
    %2 = tpu.matmul %0, %1, %cst {dimension_numbers = #tpu.dot_dimension_numbers<[1], [0], [0], [1], [0, 0, 1, 1], [], []>} : vector<8x32xf32>, vector<32x128xf32>, vector<8x128xf32> -> vector<8x128xf32>
    %c0_3 = arith.constant 0 : index
    %c0_4 = arith.constant 0 : index
    %3 = vector.load %arg4[%c0_3, %c0_4] : memref<1x128xf32, #tpu.memory_space<vmem>>, vector<1x128xf32>
    %4 = vector.broadcast %3 : vector<1x128xf32> to vector<8x128xf32>
    %5 = arith.addf %2, %4 : vector<8x128xf32>
    %c0_5 = arith.constant 0 : index
    %c0_6 = arith.constant 0 : index
    %6 = vector.load %arg5[%c0_5, %c0_6] : memref<8x128xf32, #tpu.memory_space<vmem>>, vector<8x128xf32>
    tpu.vector_store %arg5[%c0_5, %c0_6], %5 {strides = array<i32>} : memref<8x128xf32, #tpu.memory_space<vmem>>, vector<8x128xf32>,
    return
  }
  func.func @transform_0(%arg0: i32, %arg1: i32) -> (i32, i32) {
    %c0_i32 = arith.constant 0 : i32
    %c0_i32_0 = arith.constant 0 : i32
    return %arg0, %c0_i32 : i32, i32
  }
  func.func @transform_1(%arg0: i32, %arg1: i32) -> (i32, i32) {
    %c0_i32 = arith.constant 0 : i32
    %c0_i32_0 = arith.constant 0 : i32
    return %c0_i32, %arg1 : i32, i32
  }
  func.func @transform_2(%arg0: i32, %arg1: i32) -> (i32, i32) {
    %c0_i32 = arith.constant 0 : i32
    %c0_i32_0 = arith.constant 0 : i32
    return %c0_i32, %arg1 : i32, i32
  }
  func.func @transform_3(%arg0: i32, %arg1: i32) -> (i32, i32) {
    %c0_i32 = arith.constant 0 : i32
    return %arg0, %arg1 : i32, i32
  }
}

</mosaic_0001>

<bundles_post_ra>
// kernel: tpu_custom_call.1
= control target key start
LH: loop header
LB: loop body
LE: loop exit
PB: predicated region body
PF: predicated region fallthrough
CT: control target
= control target key end

     0   :  { %8 = vsyncpa [#allocation3], 0  ;;  %s322_s0 = inlined_call_operand.hbm [shape: f32[8,32], index: 0, kind: input, shape index: {}]   ;;  %s323_s1 = inlined_call_operand.hbm [shape: f32[32,128], index: 1, kind: input, shape index: {}]   ;;  %s324_s2 = inlined_call_operand.vmem [shape: f32[1,128], index: 2, kind: input, shape index: {}]   ;;  %s325_s3 = inlined_call_operand.hbm [shape: f32[8,128], index: 3, kind: output, shape index: {}]  }
   0x1   :  { %9 = vsyncpa [#allocation6], 0 }
   0x2   :  { %10 = vsyncpa [#allocation4], 0  ;;  %s248_s12 = smov [#allocation2]   ;;  %s249_s14 = smov [#allocation5]  }
   0x3   :  { %s17_s13 = sshll.u32 %s248_s12, 4  ;;  %s26_s15 = sshll.u32 %s249_s14, 4  ;;  %s18_s13 = int_to_ptr.vmem [resolvable:$true] %s17_s13  ;;  %s276_s15 = int_to_ptr.vmem [resolvable:$true] %s26_s15 }
   0x4   :  { %s176_s18 = scalar_lea.hbm %s322_s0, 128 }
   0x5   :  { %p177_p0 = scmp.ne.s32.totalorder %s322_s0, %s176_s18  ;;  %p180_p1 = scmp.lt.u32.totalorder %s176_s18, %s322_s0 }
   0x7   :  { %p182_p2 = pnand %p180_p1, %p177_p0 }
   0x9   :  { %185 = shalt.err (!%p182_p2)
}
   0xa   :  { %s186_s23 = scalar_lea.vmem %s18_s13, 128  ;;  %p191_p4 = scmp.lt.s32.totalorder %s18_s13, %s18_s13 }
   0xb   :  { %p187_p3 = scmp.ne.s32.totalorder %s18_s13, %s186_s23  ;;  %p192_p5 = scmp.lt.s32.totalorder %s186_s23, %s186_s23 }
   0xd   :  { %p193_p6 = por %p192_p5, %p191_p4 }
   0xf   :  { %p194_p7 = pnand %p193_p6, %p187_p3 }
  0x11   :  { %197 = shalt.err (!%p194_p7)
}
  0x12   :  { %20 = dma.hbm_to_vmem [thread:$0]  %s322_s0, 128, %s18_s13, [#allocation3]  }
  0x13   :  { %s198_s28 = scalar_lea.hbm %s323_s1, 512 }
  0x14   :  { %p199_p8 = scmp.ne.s32.totalorder %s323_s1, %s198_s28  ;;  %p202_p9 = scmp.lt.u32.totalorder %s198_s28, %s323_s1 }
  0x16   :  { %p204_p10 = pnand %p202_p9, %p199_p8 }
  0x18   :  { %207 = shalt.err (!%p204_p10)
}
  0x19   :  { %s208_s6 = scalar_lea.vmem %s276_s15, 512  ;;  %p213_p12 = scmp.lt.s32.totalorder %s276_s15, %s276_s15 }
  0x1a   :  { %p209_p11 = scmp.ne.s32.totalorder %s276_s15, %s208_s6  ;;  %p214_p13 = scmp.lt.s32.totalorder %s208_s6, %s208_s6 }
  0x1c   :  { %p215_p0 = por %p214_p13, %p213_p12 }
  0x1e   :  { %p216_p1 = pnand %p215_p0, %p209_p11 }
  0x20   :  { %219 = shalt.err (!%p216_p1)
}
  0x21   :  { %s250_s0 = smov 128   ;;  %s251_s7 = smov 8  }
  0x22   :  { %32 = dma.hbm_to_vmem [thread:$0]  %s323_s1, 512, %s276_s15, [#allocation6], %s250_s0, %s250_s0, %s251_s7  }
  0x23   :  { %242 = dma.done.wait [#allocation3], 128  }
  0x24   :  { %243 = vsyncadd [#allocation3], 4294967168 }
  0x25   :  { %244 = dma.done.wait [#allocation6], 512  }
  0x26   :  { %245 = vsyncadd [#allocation6], 4294966784  ;;  %v252_v0 = vmov 0.0|0.0   ;;  %vm253_vm0 = vmmov 0   ;;  %v254_v1 = vmov 0.0   ;;  %v42_v2 = vld [vmem:[#allocation5] sm:$0xff] }
  0x27   :  { %162 = vmatprep.subr.bf16.mxu0 %v252_v0  ;;  %159 = vmatprep.mubr.msk.f32.mxu0 %vm253_vm0, %v254_v1  ;;  %v43_v3 = vld [vmem:[#allocation5 + $0x8] sm:$0xff]  ;;  %v44_v4 = vld [vmem:[#allocation5 + $0x10] sm:$0xff]  ;;  %v45_v6 = vld [vmem:[#allocation5 + $0x18] sm:$0xff]  ;;  %vm53_vm1 = vcmask 261120   ;;  %s255_s11 = smov [#allocation7]  }
  0x28   :  { %v163_v5 = vpack.c.bf16 %v43_v3, %v42_v2  ;;  %v166_v7 = vpack.c.bf16 %v45_v6, %v44_v4  ;;  %v41_v8 = vld [vmem:[#allocation2] sm:$0xff]  ;;  %s134_s12 = sshll.u32 %s255_s11, 4  ;;  %s135_s12 = int_to_ptr.vmem [resolvable:$true] %s134_s12 }
  0x29   :  { %v144_v9 = vld [vmem:[%s324_s2] ss:$0 sm:$0xff]  ;;  %s220_s13 = scalar_lea.vmem %s135_s12, 128  ;;  %p225_p3 = scmp.lt.s32.totalorder %s135_s12, %s135_s12 }
  0x2a   :  { %164 = vmatpush3.bf16.msra.mxu0 %v163_v5  ;;  %p221_p2 = scmp.ne.s32.totalorder %s135_s12, %s220_s13  ;;  %p226_p4 = scmp.lt.s32.totalorder %s220_s13, %s220_s13 }
  0x2b   :  { %165 = vmatprep.subr.bf16.mxu0 %v252_v0 }
  0x2c   :  { %p227_p5 = por %p226_p4, %p225_p3 }
  0x2e   :  { %167 = vmatpush3.bf16.msra.mxu0 %v166_v7  ;;  %p228_p6 = pnand %p227_p5, %p221_p2 }
  0x31   :  { %160 = vmatmul.mubr.msk.f32.vlgmr.msra.gmra.mrb[0].mxu0 %vm53_vm1, %v41_v8 }
 0x104   :  { %v123_v10 = vpop.f32.mrb[0].mxu0 }
 0x105   :  { %v124_v11 = vadd.f32 %v144_v9, %v123_v10  ;;  %v161_v12 = vpop.f32.mrb[1].mxu0 }
 0x107   :  { %127 = vst [vmem:[#allocation7] sm:$0xff] %v124_v11 }
 0x108   :  { %231 = shalt.err (!%p228_p6)
}
 0x109   :  { %s232_s16 = scalar_lea.hbm %s325_s3, 128 }
 0x10a   :  { %p233_p7 = scmp.ne.s32.totalorder %s325_s3, %s232_s16  ;;  %p236_p8 = scmp.lt.u32.totalorder %s232_s16, %s325_s3 }
 0x10c   :  { %p238_p9 = pnand %p236_p8, %p233_p7 }
 0x10e   :  { %241 = shalt.err (!%p238_p9)
}
 0x10f   :  { %137 = dma.vmem_to_hbm [thread:$0]  %s135_s12, 128, %s325_s3, [#allocation4]  }
 0x110   :  { %246 = dma.done.wait [#allocation4], 128  }
 0x111   :  { %247 = vsyncadd [#allocation4], 4294967168 }
 0x112   :  { %141 = vsyncpa [#allocation3], 1 }
 0x113   :  { %142 = vsyncpa [#allocation6], 1 }
 0x114   :  { %143 = vsyncpa [#allocation4], 1 }

</bundles_post_ra>
